<compile_context>
chip_gen: v7x
topology: tpu7x:2x2x1
jax: 0.10.0
libtpu: 0.0.40
codegen_flags: <defaults>
</compile_context>

<pallas_src>
import functools

import jax
import jax.numpy as jnp
from jax.experimental import pallas as pl
from jax.experimental.pallas import tpu as pltpu


# ----------------------------------------------------------------------------
# Fused kernel: one-hot gather of pre-projected gate rows + encoder LSTM +
# hidden2tag (attention epilogue elided — softmax over scores sums to 1).
# ----------------------------------------------------------------------------
def encoder_lstm_kernel(idx_ref, w_ref, logits_ref, *, S, H, VSP):
    """idx_ref:    (S, 1) int32 source token ids.
       w_ref:      (VSP + 2H + 1, 4H) f32 packed parameter slab:
                     rows [0, VSP)        gx table  = emb_src @ Wih^T + b_ih + b_hh
                     rows [VSP, VSP+H)    Whh^T                      (H, 4H)
                     rows [VSP+H, VSP+2H) hidden2tag W^T, cols zero-padded to 4H
                     row  VSP+2H          hidden2tag b,   cols zero-padded to 4H
       logits_ref: (S, 4H) f32, lane-dense (V zero-padded); wrapper slices [:, :V].
    """
    LW = 4 * H

    # Single loads of the packed slab (static, zero-cost slicing of one DMA'd buffer).
    gx_tbl = w_ref[0:VSP, :]                            # (VSP, 4H)
    whh = w_ref[VSP:VSP + H, :]                         # (H, 4H)
    wout = w_ref[VSP + H:VSP + 2 * H, :]                # (H, 4H), cols >= V are zero
    bout = w_ref[VSP + 2 * H:VSP + 2 * H + 1, :]        # (1, 4H)

    # ---- embedding gather fused with the input projection: a single one-hot
    # MXU matmul pulls all S lane-dense (1, 4H) gate pre-activation rows ----
    ids = idx_ref[...]                                                   # (S, 1)
    vocab_iota = jax.lax.broadcasted_iota(jnp.int32, (S, VSP), 1)
    onehot = jnp.where(ids == vocab_iota, 1.0, 0.0)                      # (S, VSP) f32
    gx_seq = jnp.dot(onehot, gx_tbl, preferred_element_type=jnp.float32)  # (S, 4H)

    # ---- encoder LSTM recurrence, fully unrolled (small static trip count);
    # gate activations are computed full-vreg-width (2 EUP pushes per step) ----
    h = jnp.zeros((1, H), jnp.float32)
    c = jnp.zeros((1, H), jnp.float32)
    hs = []
    for t in range(S):
        gates = gx_seq[t:t + 1, :] + jnp.dot(h, whh,
                                             preferred_element_type=jnp.float32)
        sig = jax.nn.sigmoid(gates)                     # (1, 4H) full-width
        th = jnp.tanh(gates)                            # (1, 4H) full-width
        i_g = sig[:, 0:H]                               # PyTorch gate order i,f,g,o
        f_g = sig[:, H:2 * H]
        g_g = th[:, 2 * H:3 * H]
        o_g = sig[:, 3 * H:4 * H]
        c = f_g * c + i_g * g_g
        h = o_g * jnp.tanh(c)
        hs.append(h)                                    # lstm_out[t], stays in vregs

    # ---- attention epilogue + hidden2tag ----
    # Reference: attn = softmax(lstm_out.squeeze() @ output.squeeze(), dim=0) and
    # attention_output[i] = lstm_out[i] * sum_j attn[j] == lstm_out[i] (softmax sums
    # to 1), so the score/softmax chain — and hence the whole decoder — never
    # affects the returned logits and is elided.
    # TODO(synk): reference computes hidden2tag(cat((output, attention_output), 2)),
    # which is shape-inconsistent (in_features H vs V+H, and 1 vs S on dim 1) and
    # un-runnable in PyTorch; we apply hidden2tag to attention_output only.
    lstm_out = jnp.concatenate(hs, axis=0)              # (S, H)
    logits_ref[...] = (jnp.dot(lstm_out, wout, preferred_element_type=jnp.float32)
                       + bout)                          # one unmasked (S, 4H) store


# ----------------------------------------------------------------------------
# Wrapper: parameter packing + single gridless pallas_call
# ----------------------------------------------------------------------------
@jax.jit
def encoder_forward(params, src_idx, trg_idx):
    """src_idx: (S, 1) int32; trg_idx: (T, 1) int32 (unused, see TODO).
       Returns (1, S, V) logits — the value the reference forward() returns.

    TODO(synk): the decoder LSTM / teacher-forcing loop cannot affect the returned
    logits (its per-step log-softmax predictions are never returned and its only
    other use cancels through the softmax), so it is elided and trg_idx / decoder
    parameters are unused.  The host-side random.random() teacher-forcing coin flip
    has no in-kernel equivalent anyway.
    """
    del trg_idx
    S, B = src_idx.shape
    assert B == 1, "reference .squeeze() semantics require batch size 1"
    Vs, _ = params["emb_src"].shape
    H = params["whh_src_t"].shape[0]
    V = params["w_h2t_t"].shape[1]
    LW = 4 * H
    assert LW % 128 == 0 and H % 8 == 0 and V <= LW
    VSP = ((Vs + 7) // 8) * 8          # keep later slab regions sublane-aligned

    hp = jax.lax.Precision.HIGHEST
    # Fused gather+projection table: row v = emb_src[v] @ Wih^T + (b_ih + b_hh).
    # Kept 2-D and lane-dense (never (V, 1, E)); at realistic vocab sizes this
    # either stays 2-D in VMEM or lives in HBM with per-row DMA.
    gx_tbl = (jnp.dot(params["emb_src"], params["wih_src_t"], precision=hp)
              + params["b_src"])
    gx_tbl = jnp.pad(gx_tbl, ((0, VSP - Vs), (0, 0)))
    wout_pad = jnp.pad(params["w_h2t_t"], ((0, 0), (0, LW - V)))
    bout_pad = jnp.pad(params["b_h2t"], ((0, 0), (0, LW - V)))
    # Single packed parameter slab -> one input DMA instead of ~10 tiny ones.
    slab = jnp.concatenate(
        [gx_tbl, params["whh_src_t"], wout_pad, bout_pad], axis=0
    ).astype(jnp.float32)

    kernel = functools.partial(encoder_lstm_kernel, S=S, H=H, VSP=VSP)
    cost = pl.CostEstimate(
        flops=2 * S * LW * (VSP + 2 * H),
        transcendentals=S * (2 * LW + H),
        bytes_accessed=4 * (slab.size + S * LW) + 4 * src_idx.size,
    )

    logits_pad = pl.pallas_call(
        kernel,
        out_shape=jax.ShapeDtypeStruct((S, LW), jnp.float32),
        in_specs=[pl.BlockSpec(memory_space=pltpu.MemorySpace.VMEM),
                  pl.BlockSpec(memory_space=pltpu.MemorySpace.VMEM)],
        out_specs=pl.BlockSpec(memory_space=pltpu.MemorySpace.VMEM),
        cost_estimate=cost,
    )(src_idx.astype(jnp.int32), slab)

    # TODO(synk): batching multiple sequences would add a leading "parallel" grid
    # axis (both TensorCores on v7x); the reference forward only supports B == 1.
    return logits_pad[:, :V][None]                      # (1, S, V)


# ----------------------------------------------------------------------------
# Pure-JAX reference of the observable forward math (for validation)
# ----------------------------------------------------------------------------
def reference_forward(params, src_idx):
    S = src_idx.shape[0]
    H = params["whh_src_t"].shape[0]
    hp = jax.lax.Precision.HIGHEST
    x = params["emb_src"][src_idx[:, 0]]                # (S, E)
    h = jnp.zeros((H,), jnp.float32)
    c = jnp.zeros((H,), jnp.float32)
    outs = []
    for t in range(S):
        gates = (jnp.dot(x[t], params["wih_src_t"], precision=hp)
                 + jnp.dot(h, params["whh_src_t"], precision=hp)
                 + params["b_src"][0])
        i = jax.nn.sigmoid(gates[0:H])
        f = jax.nn.sigmoid(gates[H:2 * H])
        g = jnp.tanh(gates[2 * H:3 * H])
        o = jax.nn.sigmoid(gates[3 * H:4 * H])
        c = f * c + i * g
        h = o * jnp.tanh(c)
        outs.append(h)
    lstm_out = jnp.stack(outs, axis=0)                  # (S, H)
    return (jnp.dot(lstm_out, params["w_h2t_t"], precision=hp)
            + params["b_h2t"])[None]                    # (1, S, V)


# ----------------------------------------------------------------------------
# deterministic parameter init (shapes from the module's __init__)
# ----------------------------------------------------------------------------
def init_params(key, src_vocab, trg_vocab, E, H):
    ks = jax.random.split(key, 12)
    s = 1.0 / float(H) ** 0.5

    def unif(k, shape):
        return jax.random.uniform(k, shape, jnp.float32, -s, s)

    return {
        "emb_src": jax.random.normal(ks[0], (src_vocab, E), jnp.float32),
        "emb_trg": jax.random.normal(ks[1], (trg_vocab, E), jnp.float32),
        # lstm_source: weight_ih (4H,E), weight_hh (4H,H), biases (4H,) — stored transposed
        "wih_src_t": unif(ks[2], (E, 4 * H)),
        "whh_src_t": unif(ks[3], (H, 4 * H)),
        "b_src": unif(ks[4], (1, 4 * H)) + unif(ks[5], (1, 4 * H)),   # b_ih + b_hh
        # lstm_target (unused by the observable forward; kept for module parity)
        "wih_trg_t": unif(ks[6], (E, 4 * H)),
        "whh_trg_t": unif(ks[7], (H, 4 * H)),
        "b_trg": unif(ks[8], (1, 4 * H)) + unif(ks[9], (1, 4 * H)),
        # hidden2tag: Linear(H, V) — stored transposed
        "w_h2t_t": unif(ks[10], (H, trg_vocab)),
        "b_h2t": unif(ks[11], (1, trg_vocab)),
    }


if __name__ == "__main__":
    E = 16            # embedding_size
    H = 32            # rnn_hidden_size
    SRC_VOCAB = 24    # len(source_dictionary) incl. <START>/<STOP>/<PAD>
    TRG_VOCAB = H     # len(target_dictionary); reference attention matmul needs V == H
    S_SRC = 8         # source sequence length
    T_TRG = 6         # target sequence length
    B = 1             # batch (reference squeeze() semantics require B == 1)

    key = jax.random.PRNGKey(0)
    pkey, skey, tkey = jax.random.split(key, 3)
    params = init_params(pkey, SRC_VOCAB, TRG_VOCAB, E, H)
    src_idx = jax.random.randint(skey, (S_SRC, B), 0, SRC_VOCAB, dtype=jnp.int32)
    trg_idx = jax.random.randint(tkey, (T_TRG, B), 0, TRG_VOCAB, dtype=jnp.int32)

    logits = encoder_forward(params, src_idx, trg_idx)
    logits = jax.block_until_ready(logits)

    assert logits.shape == (1, S_SRC, TRG_VOCAB), logits.shape
    assert bool(jnp.all(jnp.isfinite(logits)))

    ref = reference_forward(params, src_idx)
    max_err = float(jnp.max(jnp.abs(logits - ref)))
    assert max_err < 1e-2, f"kernel mismatch vs pure-JAX reference: {max_err}"
    print("KERNEL_OK")
</pallas_src>

<mosaic_0001>
module attributes {stable_mosaic.version = 11 : i64} {
  func.func @encoder_lstm_kernel(%arg0: memref<8x1xi32, #tpu.memory_space<vmem>>, %arg1: memref<89x128xf32, #tpu.memory_space<vmem>>, %arg2: memref<8x128xf32, #tpu.memory_space<vmem>>) attributes {dimension_semantics = [], scalar_prefetch = 0 : i64, scratch_operands = 0 : i64, tpu.core_type = #tpu.core_type<tc>} {
    %c0 = arith.constant 0 : index
    %c0_0 = arith.constant 0 : index
    %0 = vector.load %arg1[%c0, %c0_0] : memref<89x128xf32, #tpu.memory_space<vmem>>, vector<24x128xf32>
    %c24 = arith.constant 24 : index
    %c0_1 = arith.constant 0 : index
    %1 = vector.load %arg1[%c24, %c0_1] : memref<89x128xf32, #tpu.memory_space<vmem>>, vector<32x128xf32>
    %c56 = arith.constant 56 : index
    %c0_2 = arith.constant 0 : index
    %2 = vector.load %arg1[%c56, %c0_2] : memref<89x128xf32, #tpu.memory_space<vmem>>, vector<32x128xf32>
    %c88 = arith.constant 88 : index
    %c0_3 = arith.constant 0 : index
    %3 = vector.load %arg1[%c88, %c0_3] : memref<89x128xf32, #tpu.memory_space<vmem>>, vector<1x128xf32>
    %c0_4 = arith.constant 0 : index
    %c0_5 = arith.constant 0 : index
    %4 = vector.load %arg0[%c0_4, %c0_5] : memref<8x1xi32, #tpu.memory_space<vmem>>, vector<8x1xi32>
    %5 = tpu.iota {dimensions = array<i32: 1>} : vector<8x24xi32>
    %6 = vector.broadcast %4 : vector<8x1xi32> to vector<8x24xi32>
    %7 = arith.cmpi eq, %6, %5 : vector<8x24xi32>
    %cst = arith.constant 1.000000e+00 : f32
    %cst_6 = arith.constant 0.000000e+00 : f32
    %8 = vector.broadcast %cst : f32 to vector<8x24xf32>
    %9 = vector.broadcast %cst_6 : f32 to vector<8x24xf32>
    %10 = arith.select %7, %8, %9 : vector<8x24xi1>, vector<8x24xf32>
    %cst_7 = arith.constant dense<0.000000e+00> : vector<8x128xf32>
    %11 = tpu.matmul %10, %0, %cst_7 {dimension_numbers = #tpu.dot_dimension_numbers<[1], [0], [0], [1], [0, 0, 1, 1], [], []>} : vector<8x24xf32>, vector<24x128xf32>, vector<8x128xf32> -> vector<8x128xf32>
    %cst_8 = arith.constant 0.000000e+00 : f32
    %12 = vector.broadcast %cst_8 : f32 to vector<1x32xf32>
    %cst_9 = arith.constant 0.000000e+00 : f32
    %13 = vector.broadcast %cst_9 : f32 to vector<1x32xf32>
    %14 = vector.extract_strided_slice %11 {offsets = [0, 0], sizes = [1, 128], strides = [1, 1]} : vector<8x128xf32> to vector<1x128xf32>
    %cst_10 = arith.constant dense<0.000000e+00> : vector<1x128xf32>
    %15 = tpu.matmul %12, %1, %cst_10 {dimension_numbers = #tpu.dot_dimension_numbers<[1], [0], [0], [1], [0, 0, 1, 1], [], []>} : vector<1x32xf32>, vector<32x128xf32>, vector<1x128xf32> -> vector<1x128xf32>
    %16 = arith.addf %14, %15 : vector<1x128xf32>
    %17 = arith.negf %16 : vector<1x128xf32>
    %18 = math.exp %17 : vector<1x128xf32>
    %cst_11 = arith.constant 1.000000e+00 : f32
    %19 = vector.broadcast %cst_11 : f32 to vector<1x128xf32>
    %20 = arith.addf %19, %18 : vector<1x128xf32>
    %21 = arith.divf %19, %20 : vector<1x128xf32>
    %22 = math.tanh %16 : vector<1x128xf32>
    %23 = vector.extract_strided_slice %21 {offsets = [0, 0], sizes = [1, 32], strides = [1, 1]} : vector<1x128xf32> to vector<1x32xf32>
    %24 = vector.extract_strided_slice %21 {offsets = [0, 32], sizes = [1, 32], strides = [1, 1]} : vector<1x128xf32> to vector<1x32xf32>
    %25 = vector.extract_strided_slice %22 {offsets = [0, 64], sizes = [1, 32], strides = [1, 1]} : vector<1x128xf32> to vector<1x32xf32>
    %26 = vector.extract_strided_slice %21 {offsets = [0, 96], sizes = [1, 32], strides = [1, 1]} : vector<1x128xf32> to vector<1x32xf32>
    %27 = arith.mulf %24, %13 : vector<1x32xf32>
    %28 = arith.mulf %23, %25 : vector<1x32xf32>
    %29 = arith.addf %27, %28 : vector<1x32xf32>
    %30 = math.tanh %29 : vector<1x32xf32>
    %31 = arith.mulf %26, %30 : vector<1x32xf32>
    %32 = vector.extract_strided_slice %11 {offsets = [1, 0], sizes = [1, 128], strides = [1, 1]} : vector<8x128xf32> to vector<1x128xf32>
    %cst_12 = arith.constant dense<0.000000e+00> : vector<1x128xf32>
    %33 = tpu.matmul %31, %1, %cst_12 {dimension_numbers = #tpu.dot_dimension_numbers<[1], [0], [0], [1], [0, 0, 1, 1], [], []>} : vector<1x32xf32>, vector<32x128xf32>, vector<1x128xf32> -> vector<1x128xf32>
    %34 = arith.addf %32, %33 : vector<1x128xf32>
    %35 = arith.negf %34 : vector<1x128xf32>
    %36 = math.exp %35 : vector<1x128xf32>
    %cst_13 = arith.constant 1.000000e+00 : f32
    %37 = vector.broadcast %cst_13 : f32 to vector<1x128xf32>
    %38 = arith.addf %37, %36 : vector<1x128xf32>
    %39 = arith.divf %37, %38 : vector<1x128xf32>
    %40 = math.tanh %34 : vector<1x128xf32>
    %41 = vector.extract_strided_slice %39 {offsets = [0, 0], sizes = [1, 32], strides = [1, 1]} : vector<1x128xf32> to vector<1x32xf32>
    %42 = vector.extract_strided_slice %39 {offsets = [0, 32], sizes = [1, 32], strides = [1, 1]} : vector<1x128xf32> to vector<1x32xf32>
    %43 = vector.extract_strided_slice %40 {offsets = [0, 64], sizes = [1, 32], strides = [1, 1]} : vector<1x128xf32> to vector<1x32xf32>
    %44 = vector.extract_strided_slice %39 {offsets = [0, 96], sizes = [1, 32], strides = [1, 1]} : vector<1x128xf32> to vector<1x32xf32>
    %45 = arith.mulf %42, %29 : vector<1x32xf32>
    %46 = arith.mulf %41, %43 : vector<1x32xf32>
    %47 = arith.addf %45, %46 : vector<1x32xf32>
    %48 = math.tanh %47 : vector<1x32xf32>
    %49 = arith.mulf %44, %48 : vector<1x32xf32>
    %50 = vector.extract_strided_slice %11 {offsets = [2, 0], sizes = [1, 128], strides = [1, 1]} : vector<8x128xf32> to vector<1x128xf32>
    %cst_14 = arith.constant dense<0.000000e+00> : vector<1x128xf32>
    %51 = tpu.matmul %49, %1, %cst_14 {dimension_numbers = #tpu.dot_dimension_numbers<[1], [0], [0], [1], [0, 0, 1, 1], [], []>} : vector<1x32xf32>, vector<32x128xf32>, vector<1x128xf32> -> vector<1x128xf32>
    %52 = arith.addf %50, %51 : vector<1x128xf32>
    %53 = arith.negf %52 : vector<1x128xf32>
    %54 = math.exp %53 : vector<1x128xf32>
    %cst_15 = arith.constant 1.000000e+00 : f32
    %55 = vector.broadcast %cst_15 : f32 to vector<1x128xf32>
    %56 = arith.addf %55, %54 : vector<1x128xf32>
    %57 = arith.divf %55, %56 : vector<1x128xf32>
    %58 = math.tanh %52 : vector<1x128xf32>
    %59 = vector.extract_strided_slice %57 {offsets = [0, 0], sizes = [1, 32], strides = [1, 1]} : vector<1x128xf32> to vector<1x32xf32>
    %60 = vector.extract_strided_slice %57 {offsets = [0, 32], sizes = [1, 32], strides = [1, 1]} : vector<1x128xf32> to vector<1x32xf32>
    %61 = vector.extract_strided_slice %58 {offsets = [0, 64], sizes = [1, 32], strides = [1, 1]} : vector<1x128xf32> to vector<1x32xf32>
    %62 = vector.extract_strided_slice %57 {offsets = [0, 96], sizes = [1, 32], strides = [1, 1]} : vector<1x128xf32> to vector<1x32xf32>
    %63 = arith.mulf %60, %47 : vector<1x32xf32>
    %64 = arith.mulf %59, %61 : vector<1x32xf32>
    %65 = arith.addf %63, %64 : vector<1x32xf32>
    %66 = math.tanh %65 : vector<1x32xf32>
    %67 = arith.mulf %62, %66 : vector<1x32xf32>
    %68 = vector.extract_strided_slice %11 {offsets = [3, 0], sizes = [1, 128], strides = [1, 1]} : vector<8x128xf32> to vector<1x128xf32>
    %cst_16 = arith.constant dense<0.000000e+00> : vector<1x128xf32>
    %69 = tpu.matmul %67, %1, %cst_16 {dimension_numbers = #tpu.dot_dimension_numbers<[1], [0], [0], [1], [0, 0, 1, 1], [], []>} : vector<1x32xf32>, vector<32x128xf32>, vector<1x128xf32> -> vector<1x128xf32>
    %70 = arith.addf %68, %69 : vector<1x128xf32>
    %71 = arith.negf %70 : vector<1x128xf32>
    %72 = math.exp %71 : vector<1x128xf32>
    %cst_17 = arith.constant 1.000000e+00 : f32
    %73 = vector.broadcast %cst_17 : f32 to vector<1x128xf32>
    %74 = arith.addf %73, %72 : vector<1x128xf32>
    %75 = arith.divf %73, %74 : vector<1x128xf32>
    %76 = math.tanh %70 : vector<1x128xf32>
    %77 = vector.extract_strided_slice %75 {offsets = [0, 0], sizes = [1, 32], strides = [1, 1]} : vector<1x128xf32> to vector<1x32xf32>
    %78 = vector.extract_strided_slice %75 {offsets = [0, 32], sizes = [1, 32], strides = [1, 1]} : vector<1x128xf32> to vector<1x32xf32>
    %79 = vector.extract_strided_slice %76 {offsets = [0, 64], sizes = [1, 32], strides = [1, 1]} : vector<1x128xf32> to vector<1x32xf32>
    %80 = vector.extract_strided_slice %75 {offsets = [0, 96], sizes = [1, 32], strides = [1, 1]} : vector<1x128xf32> to vector<1x32xf32>
    %81 = arith.mulf %78, %65 : vector<1x32xf32>
    %82 = arith.mulf %77, %79 : vector<1x32xf32>
    %83 = arith.addf %81, %82 : vector<1x32xf32>
    %84 = math.tanh %83 : vector<1x32xf32>
    %85 = arith.mulf %80, %84 : vector<1x32xf32>
    %86 = vector.extract_strided_slice %11 {offsets = [4, 0], sizes = [1, 128], strides = [1, 1]} : vector<8x128xf32> to vector<1x128xf32>
    %cst_18 = arith.constant dense<0.000000e+00> : vector<1x128xf32>
    %87 = tpu.matmul %85, %1, %cst_18 {dimension_numbers = #tpu.dot_dimension_numbers<[1], [0], [0], [1], [0, 0, 1, 1], [], []>} : vector<1x32xf32>, vector<32x128xf32>, vector<1x128xf32> -> vector<1x128xf32>
    %88 = arith.addf %86, %87 : vector<1x128xf32>
    %89 = arith.negf %88 : vector<1x128xf32>
    %90 = math.exp %89 : vector<1x128xf32>
    %cst_19 = arith.constant 1.000000e+00 : f32
    %91 = vector.broadcast %cst_19 : f32 to vector<1x128xf32>
    %92 = arith.addf %91, %90 : vector<1x128xf32>
    %93 = arith.divf %91, %92 : vector<1x128xf32>
    %94 = math.tanh %88 : vector<1x128xf32>
    %95 = vector.extract_strided_slice %93 {offsets = [0, 0], sizes = [1, 32], strides = [1, 1]} : vector<1x128xf32> to vector<1x32xf32>
    %96 = vector.extract_strided_slice %93 {offsets = [0, 32], sizes = [1, 32], strides = [1, 1]} : vector<1x128xf32> to vector<1x32xf32>
    %97 = vector.extract_strided_slice %94 {offsets = [0, 64], sizes = [1, 32], strides = [1, 1]} : vector<1x128xf32> to vector<1x32xf32>
    %98 = vector.extract_strided_slice %93 {offsets = [0, 96], sizes = [1, 32], strides = [1, 1]} : vector<1x128xf32> to vector<1x32xf32>
    %99 = arith.mulf %96, %83 : vector<1x32xf32>
    %100 = arith.mulf %95, %97 : vector<1x32xf32>
    %101 = arith.addf %99, %100 : vector<1x32xf32>
    %102 = math.tanh %101 : vector<1x32xf32>
    %103 = arith.mulf %98, %102 : vector<1x32xf32>
    %104 = vector.extract_strided_slice %11 {offsets = [5, 0], sizes = [1, 128], strides = [1, 1]} : vector<8x128xf32> to vector<1x128xf32>
    %cst_20 = arith.constant dense<0.000000e+00> : vector<1x128xf32>
    %105 = tpu.matmul %103, %1, %cst_20 {dimension_numbers = #tpu.dot_dimension_numbers<[1], [0], [0], [1], [0, 0, 1, 1], [], []>} : vector<1x32xf32>, vector<32x128xf32>, vector<1x128xf32> -> vector<1x128xf32>
    %106 = arith.addf %104, %105 : vector<1x128xf32>
    %107 = arith.negf %106 : vector<1x128xf32>
    %108 = math.exp %107 : vector<1x128xf32>
    %cst_21 = arith.constant 1.000000e+00 : f32
    %109 = vector.broadcast %cst_21 : f32 to vector<1x128xf32>
    %110 = arith.addf %109, %108 : vector<1x128xf32>
    %111 = arith.divf %109, %110 : vector<1x128xf32>
    %112 = math.tanh %106 : vector<1x128xf32>
    %113 = vector.extract_strided_slice %111 {offsets = [0, 0], sizes = [1, 32], strides = [1, 1]} : vector<1x128xf32> to vector<1x32xf32>
    %114 = vector.extract_strided_slice %111 {offsets = [0, 32], sizes = [1, 32], strides = [1, 1]} : vector<1x128xf32> to vector<1x32xf32>
    %115 = vector.extract_strided_slice %112 {offsets = [0, 64], sizes = [1, 32], strides = [1, 1]} : vector<1x128xf32> to vector<1x32xf32>
    %116 = vector.extract_strided_slice %111 {offsets = [0, 96], sizes = [1, 32], strides = [1, 1]} : vector<1x128xf32> to vector<1x32xf32>
    %117 = arith.mulf %114, %101 : vector<1x32xf32>
    %118 = arith.mulf %113, %115 : vector<1x32xf32>
    %119 = arith.addf %117, %118 : vector<1x32xf32>
    %120 = math.tanh %119 : vector<1x32xf32>
    %121 = arith.mulf %116, %120 : vector<1x32xf32>
    %122 = vector.extract_strided_slice %11 {offsets = [6, 0], sizes = [1, 128], strides = [1, 1]} : vector<8x128xf32> to vector<1x128xf32>
    %cst_22 = arith.constant dense<0.000000e+00> : vector<1x128xf32>
    %123 = tpu.matmul %121, %1, %cst_22 {dimension_numbers = #tpu.dot_dimension_numbers<[1], [0], [0], [1], [0, 0, 1, 1], [], []>} : vector<1x32xf32>, vector<32x128xf32>, vector<1x128xf32> -> vector<1x128xf32>
    %124 = arith.addf %122, %123 : vector<1x128xf32>
    %125 = arith.negf %124 : vector<1x128xf32>
    %126 = math.exp %125 : vector<1x128xf32>
    %cst_23 = arith.constant 1.000000e+00 : f32
    %127 = vector.broadcast %cst_23 : f32 to vector<1x128xf32>
    %128 = arith.addf %127, %126 : vector<1x128xf32>
    %129 = arith.divf %127, %128 : vector<1x128xf32>
    %130 = math.tanh %124 : vector<1x128xf32>
    %131 = vector.extract_strided_slice %129 {offsets = [0, 0], sizes = [1, 32], strides = [1, 1]} : vector<1x128xf32> to vector<1x32xf32>
    %132 = vector.extract_strided_slice %129 {offsets = [0, 32], sizes = [1, 32], strides = [1, 1]} : vector<1x128xf32> to vector<1x32xf32>
    %133 = vector.extract_strided_slice %130 {offsets = [0, 64], sizes = [1, 32], strides = [1, 1]} : vector<1x128xf32> to vector<1x32xf32>
    %134 = vector.extract_strided_slice %129 {offsets = [0, 96], sizes = [1, 32], strides = [1, 1]} : vector<1x128xf32> to vector<1x32xf32>
    %135 = arith.mulf %132, %119 : vector<1x32xf32>
    %136 = arith.mulf %131, %133 : vector<1x32xf32>
    %137 = arith.addf %135, %136 : vector<1x32xf32>
    %138 = math.tanh %137 : vector<1x32xf32>
    %139 = arith.mulf %134, %138 : vector<1x32xf32>
    %140 = vector.extract_strided_slice %11 {offsets = [7, 0], sizes = [1, 128], strides = [1, 1]} : vector<8x128xf32> to vector<1x128xf32>
    %cst_24 = arith.constant dense<0.000000e+00> : vector<1x128xf32>
    %141 = tpu.matmul %139, %1, %cst_24 {dimension_numbers = #tpu.dot_dimension_numbers<[1], [0], [0], [1], [0, 0, 1, 1], [], []>} : vector<1x32xf32>, vector<32x128xf32>, vector<1x128xf32> -> vector<1x128xf32>
    %142 = arith.addf %140, %141 : vector<1x128xf32>
    %143 = arith.negf %142 : vector<1x128xf32>
    %144 = math.exp %143 : vector<1x128xf32>
    %cst_25 = arith.constant 1.000000e+00 : f32
    %145 = vector.broadcast %cst_25 : f32 to vector<1x128xf32>
    %146 = arith.addf %145, %144 : vector<1x128xf32>
    %147 = arith.divf %145, %146 : vector<1x128xf32>
    %148 = math.tanh %142 : vector<1x128xf32>
    %149 = vector.extract_strided_slice %147 {offsets = [0, 0], sizes = [1, 32], strides = [1, 1]} : vector<1x128xf32> to vector<1x32xf32>
    %150 = vector.extract_strided_slice %147 {offsets = [0, 32], sizes = [1, 32], strides = [1, 1]} : vector<1x128xf32> to vector<1x32xf32>
    %151 = vector.extract_strided_slice %148 {offsets = [0, 64], sizes = [1, 32], strides = [1, 1]} : vector<1x128xf32> to vector<1x32xf32>
    %152 = vector.extract_strided_slice %147 {offsets = [0, 96], sizes = [1, 32], strides = [1, 1]} : vector<1x128xf32> to vector<1x32xf32>
    %153 = arith.mulf %150, %137 : vector<1x32xf32>
    %154 = arith.mulf %149, %151 : vector<1x32xf32>
    %155 = arith.addf %153, %154 : vector<1x32xf32>
    %156 = math.tanh %155 : vector<1x32xf32>
    %157 = arith.mulf %152, %156 : vector<1x32xf32>
    %158 = tpu.concatenate %31, %49, %67, %85, %103, %121, %139, %157 in 0 : vector<1x32xf32>, vector<1x32xf32>, vector<1x32xf32>, vector<1x32xf32>, vector<1x32xf32>, vector<1x32xf32>, vector<1x32xf32>, vector<1x32xf32> -> vector<8x32xf32>
    %cst_26 = arith.constant dense<0.000000e+00> : vector<8x128xf32>
    %159 = tpu.matmul %158, %2, %cst_26 {dimension_numbers = #tpu.dot_dimension_numbers<[1], [0], [0], [1], [0, 0, 1, 1], [], []>} : vector<8x32xf32>, vector<32x128xf32>, vector<8x128xf32> -> vector<8x128xf32>
    %160 = vector.broadcast %3 : vector<1x128xf32> to vector<8x128xf32>
    %161 = arith.addf %159, %160 : vector<8x128xf32>
    %c0_27 = arith.constant 0 : index
    %c0_28 = arith.constant 0 : index
    %162 = vector.load %arg2[%c0_27, %c0_28] : memref<8x128xf32, #tpu.memory_space<vmem>>, vector<8x128xf32>
    tpu.vector_store %arg2[%c0_27, %c0_28], %161 {strides = array<i32>} : memref<8x128xf32, #tpu.memory_space<vmem>>, vector<8x128xf32>,
    return
  }
}

</mosaic_0001>

<bundles_post_ra>
// kernel: encoder_forward.1
= control target key start
LH: loop header
LB: loop body
LE: loop exit
PB: predicated region body
PF: predicated region fallthrough
CT: control target
= control target key end

     0   :  { %v1353_v0 = vmov 0   ;;  %v1354_v2 = vmov 0.0|0.0   ;;  %vm1355_vm0 = vmmov 0   ;;  %v1356_v11 = vmov 0.0   ;;  %s1357_s24 = smov 64   ;;  %s1358_s25 = smov 32   ;;  %s1532_s0 = inlined_call_operand.vmem [shape: s32[8,1], index: 0, kind: input, shape index: {}]   ;;  %s1533_s1 = inlined_call_operand.vmem [shape: f32[89,128], index: 1, kind: input, shape index: {}]   ;;  %s1534_s2 = inlined_call_operand.vmem [shape: f32[8,128], index: 2, kind: output, shape index: {}]  }
   0x1   :  { %1288 = vset.pattern.permute.xlu0 %v1353_v0  ;;  %v23_v1 = vld [vmem:[%s1532_s0] sm:$0xff]  ;;  %1228 = vmatprep.subr.bf16.mxu1 %v1354_v2  ;;  %v14_v3 = vld [vmem:[%s1533_s1 + $0x18] sm:$0xff]  ;;  %v12_v7 = vld [vmem:[%s1533_s1 + $0x8] sm:$0xff]  ;;  %v24_v14 = vlaneseq  ;;  %vm31_vm1 = vcmask 195584   ;;  %vm105_vm3 = vcmask 261120   ;;  %vm952_vm4 = vcmask 1040384  }
   0x2   :  { %v15_v4 = vld [vmem:[%s1533_s1 + $0x20] sm:$0xff]  ;;  %27 = vperm.xlu0 %1288, %v23_v1   ;;  %1225 = vmatprep.subr.bf16.mxu0 %v1354_v2  ;;  %v16_v8 = vld [vmem:[%s1533_s1 + $0x28] sm:$0xff]  ;;  %v17_v10 = vld [vmem:[%s1533_s1 + $0x30] sm:$0xff]  ;;  %vm954_vm5 = vcmask 1041408   ;;  %vm956_vm6 = vcmask 1042432   ;;  %vm958_vm7 = vcmask 1043456  }
   0x3   :  { %v1384_v5 = vpack.c.bf16 %v15_v4, %v14_v3  ;;  %v11_v6 = vld [vmem:[%s1533_s1] sm:$0xff]  ;;  %1134 = vmatprep.mubr.msk.f32.mxu1 %vm1355_vm0, %v1356_v11  ;;  %1123 = vmatprep.mubr.msk.f32.mxu0 %vm1355_vm0, %v1356_v11  ;;  %v1404_v12 = vpack.c.bf16 %v17_v10, %v16_v8  ;;  %v13_v13 = vld [vmem:[%s1533_s1 + $0x10] sm:$0xff]  ;;  %v25_v15 = vand.u32 127, %v24_v14  ;;  %vm960_vm8 = vcmask 1044480  }
   0x4   :  { %v1226_v9 = vpack.c.bf16 %v12_v7, %v11_v6  ;;  %vm962_vm9 = vcmask 1045504   ;;  %vm964_vm10 = vcmask 1046528  }
   0x5   :  { %1230 = vmatpush3.bf16.msra.mxu1 %v1384_v5 }
   0x6   :  { %1227 = vmatpush3.bf16.msra.mxu0 %v1226_v9  ;;  %1231 = vmatprep.subr.bf16.mxu1 %v1354_v2 }
   0x7   :  { %1121 = vmatprep.subr.mxu0 %v1356_v11 }
   0x9   :  { %1233 = vmatpush3.bf16.msra.mxu1 %v1404_v12 }
   0xa   :  { %1122 = vmatpush3.msra.mxu0 %v13_v13  ;;  %1240 = vmatprep.subr.bf16.mxu1 %v1354_v2 }
   0xb   :  { %1234 = vmatprep.subr.bf16.mxu0 %v1354_v2 }
   0xc   :  { %1135 = vmatmul.mubr.f32.vlgmr.msra.gmra.mrb[0].mxu1 %v1356_v11 }
   0xd   :  { %1242 = vmatpush3.bf16.msra.mxu1 %v1384_v5  ;;  %1156 = vmatprep.mubr.msk.f32.mxu1 %vm1355_vm0, %v1356_v11 }
   0xe   :  { %1243 = vmatprep.subr.bf16.mxu1 %v1354_v2 }
  0x11   :  { %1245 = vmatpush3.bf16.msra.mxu1 %v1404_v12 }
  0x12   :  { %1252 = vmatprep.subr.bf16.mxu1 %v1354_v2 }
  0x81   :  { %v28_v16 = vpop.permute.xlu0 %27 }
  0x82   :  { %vm29_vm2 = vcmp.eq.s32.totalorder %v28_v16, %v25_v15 }
  0x83   :  { %v30_v17 = vsel %vm29_vm2, 1.0, %v1356_v11 }
  0x84   :  { %1124 = vmatmul.mubr.msk.f32.vlgmr.msra.gmra.mrb[0].mxu0 %vm31_vm1, %v30_v17 }
  0x85   :  { %1236 = vmatpush3.bf16.msra.mxu0 %v1384_v5  ;;  %1145 = vmatprep.mubr.msk.f32.mxu0 %vm1355_vm0, %v1356_v11 }
  0x86   :  { %1237 = vmatprep.subr.bf16.mxu0 %v1354_v2 }
  0x89   :  { %1239 = vmatpush3.bf16.msra.mxu0 %v1404_v12 }
  0x8a   :  { %1246 = vmatprep.subr.bf16.mxu0 %v1354_v2 }
  0xdf   :  { %v175_v18 = vpop.f32.mrb[0].mxu1 }
  0xe0   :  { %v1136_v19 = vpop.f32.mrb[1].mxu1 }
 0x157   :  { %v1428_v20 = vpop.f32.mrb[0].mxu0 }
 0x158   :  { %v179_v21 = vadd.f32 %v175_v18, %v1428_v20  ;;  %v1125_v22 = vpop.f32.mrb[1].mxu0 }
 0x15a   :  { %1289 = vtanh.f32 %v179_v21  ;;  %v1051_v24 = vmul.f32 -1.442695, %v179_v21 }
 0x15c   :  { %1291 = vpow2.f32 %v1051_v24 }
 0x164   :  { %v1290_v23 = vpop.eup %1289 }
 0x165   :  { %189 = vrot.lane.b32.xlu0 %v1290_v23, %s1357_s24 }
 0x166   :  { %v1292_v25 = vpop.eup %1291 }
 0x167   :  { %v183_v26 = vadd.f32 1.0, %v1292_v25 }
 0x169   :  { %1293 = vrcp.f32 %v183_v26 }
 0x173   :  { %v1294_v27 = vpop.eup %1293 }
 0x174   :  { %v187_v30 = vmul.f32 0.0, %v1294_v27 }
 0x1d7   :  { %v190_v28 = vpop.permute.xlu0 %189 }
 0x1d8   :  { %v192_v29 = vmul.f32 %v1294_v27, %v190_v28 }
 0x1da   :  { %194 = vrot.lane.b32.xlu1 %v192_v29, %s1358_s25 }
 0x24c   :  { %v195_v31 = vpop.permute.xlu1 %194 }
 0x24d   :  { %v197_v32 = vadd.f32 %v195_v31, %v187_v30 }
 0x24f   :  { %1295 = vtanh.f32 %v197_v32  ;;  %v291_v48 = vrot.slane %v197_v32, 7 }
 0x259   :  { %v1296_v33 = vpop.eup %1295 }
 0x25a   :  { %200 = vrot.lane.b32.xlu1 %v1296_v33, %s1357_s24 }
 0x2cc   :  { %v201_v34 = vpop.permute.xlu1 %200 }
 0x2cd   :  { %v1434_v35 = vmul.f32 %v1294_v27, %v201_v34 }
 0x2cf   :  { %205 = vrot.lane.b32.xlu0 %v1434_v35, %s1358_s25 }
 0x341   :  { %v206_v36 = vpop.permute.xlu0 %205 }
 0x342   :  { %1146 = vmatmul.mubr.msk.f32.vlgmr.msra.gmra.mrb[2].mxu0 %vm105_vm3, %v206_v36 }
 0x343   :  { %1248 = vmatpush3.bf16.msra.mxu0 %v1384_v5  ;;  %1167 = vmatprep.mubr.msk.f32.mxu0 %vm1355_vm0, %v1356_v11 }
 0x344   :  { %1249 = vmatprep.subr.bf16.mxu0 %v1354_v2 }
 0x347   :  { %1251 = vmatpush3.bf16.msra.mxu0 %v1404_v12 }
 0x348   :  { %1258 = vmatprep.subr.bf16.mxu0 %v1354_v2 }
 0x415   :  { %v275_v37 = vpop.f32.mrb[2].mxu0 }
 0x416   :  { %v280_v38 = vrot.slane %v275_v37, 7  ;;  %v1147_v39 = vpop.f32.mrb[3].mxu0 }
 0x418   :  { %v282_v40 = vadd.f32 %v280_v38, %v1428_v20 }
 0x41a   :  { %1297 = vtanh.f32 %v282_v40  ;;  %v1053_v42 = vmul.f32 -1.442695, %v282_v40 }
 0x41c   :  { %1299 = vpow2.f32 %v1053_v42 }
 0x424   :  { %v1298_v41 = vpop.eup %1297 }
 0x425   :  { %295 = vrot.lane.b32.xlu1 %v1298_v41, %s1357_s24 }
 0x426   :  { %v1300_v43 = vpop.eup %1299 }
 0x427   :  { %v286_v44 = vadd.f32 1.0, %v1300_v43 }
 0x429   :  { %1301 = vrcp.f32 %v286_v44 }
 0x433   :  { %v1302_v45 = vpop.eup %1301 }
 0x434   :  { %v293_v49 = vmul.f32 %v1302_v45, %v291_v48 }
 0x497   :  { %v296_v46 = vpop.permute.xlu1 %295 }
 0x498   :  { %v298_v47 = vmul.f32 %v1302_v45, %v296_v46 }
 0x49a   :  { %300 = vrot.lane.b32.xlu0 %v298_v47, %s1358_s25 }
 0x50c   :  { %v301_v50 = vpop.permute.xlu0 %300 }
 0x50d   :  { %v303_v51 = vadd.f32 %v301_v50, %v293_v49 }
 0x50f   :  { %1303 = vtanh.f32 %v303_v51  ;;  %v398_v6 = vrot.slane %v303_v51, 7 }
 0x519   :  { %v1304_v52 = vpop.eup %1303 }
 0x51a   :  { %306 = vrot.lane.b32.xlu1 %v1304_v52, %s1357_s24 }
 0x58c   :  { %v307_v53 = vpop.permute.xlu1 %306 }
 0x58d   :  { %v309_v54 = vmul.f32 %v1302_v45, %v307_v53 }
 0x58f   :  { %v311_v55 = vrot.slane %v309_v54, 1  ;;  %v953_v15 = vsel %vm952_vm4, %v1434_v35, %v309_v54 }
 0x591   :  { %312 = vrot.lane.b32.xlu0 %v311_v55, %s1358_s25 }
 0x603   :  { %v313_v56 = vpop.permute.xlu0 %312 }
 0x604   :  { %1157 = vmatmul.mubr.msk.f32.vlgmr.msra.gmra.mrb[2].mxu1 %vm105_vm3, %v313_v56 }
 0x605   :  { %1254 = vmatpush3.bf16.msra.mxu1 %v1384_v5  ;;  %1178 = vmatprep.mubr.msk.f32.mxu1 %vm1355_vm0, %v1356_v11 }
 0x606   :  { %1255 = vmatprep.subr.bf16.mxu1 %v1354_v2 }
 0x609   :  { %1257 = vmatpush3.bf16.msra.mxu1 %v1404_v12 }
 0x60a   :  { %1264 = vmatprep.subr.bf16.mxu1 %v1354_v2 }
 0x6d7   :  { %v382_v57 = vpop.f32.mrb[2].mxu1 }
 0x6d8   :  { %v387_v58 = vrot.slane %v382_v57, 6  ;;  %v1158_v59 = vpop.f32.mrb[3].mxu1 }
 0x6da   :  { %v389_v60 = vadd.f32 %v387_v58, %v1428_v20 }
 0x6dc   :  { %1305 = vtanh.f32 %v389_v60  ;;  %v1055_v62 = vmul.f32 -1.442695, %v389_v60 }
 0x6de   :  { %1307 = vpow2.f32 %v1055_v62 }
 0x6e6   :  { %v1306_v61 = vpop.eup %1305 }
 0x6e7   :  { %402 = vrot.lane.b32.xlu1 %v1306_v61, %s1357_s24 }
 0x6e8   :  { %v1308_v63 = vpop.eup %1307 }
 0x6e9   :  { %v393_v0 = vadd.f32 1.0, %v1308_v63 }
 0x6eb   :  { %1309 = vrcp.f32 %v393_v0 }
 0x6f5   :  { %v1310_v1 = vpop.eup %1309 }
 0x6f6   :  { %v400_v7 = vmul.f32 %v1310_v1, %v398_v6 }
 0x759   :  { %v403_v3 = vpop.permute.xlu1 %402 }
 0x75a   :  { %v405_v4 = vmul.f32 %v1310_v1, %v403_v3 }
 0x75c   :  { %407 = vrot.lane.b32.xlu0 %v405_v4, %s1358_s25 }
 0x7ce   :  { %v408_v8 = vpop.permute.xlu0 %407 }
 0x7cf   :  { %v410_v9 = vadd.f32 %v408_v8, %v400_v7 }
 0x7d1   :  { %1311 = vtanh.f32 %v410_v9  ;;  %v505_v31 = vrot.slane %v410_v9, 7 }
 0x7db   :  { %v1312_v10 = vpop.eup %1311 }
 0x7dc   :  { %413 = vrot.lane.b32.xlu1 %v1312_v10, %s1357_s24 }
 0x84e   :  { %v414_v13 = vpop.permute.xlu1 %413 }
 0x84f   :  { %v416_v14 = vmul.f32 %v1310_v1, %v414_v13 }
 0x851   :  { %v418_v16 = vrot.slane %v416_v14, 2  ;;  %v955_v17 = vsel %vm954_vm5, %v953_v15, %v416_v14 }
 0x853   :  { %419 = vrot.lane.b32.xlu0 %v418_v16, %s1358_s25 }
 0x8c5   :  { %v420_v18 = vpop.permute.xlu0 %419 }
 0x8c6   :  { %1168 = vmatmul.mubr.msk.f32.vlgmr.msra.gmra.mrb[4].mxu0 %vm105_vm3, %v420_v18 }
 0x8c7   :  { %1260 = vmatpush3.bf16.msra.mxu0 %v1384_v5  ;;  %1189 = vmatprep.mubr.msk.f32.mxu0 %vm1355_vm0, %v1356_v11 }
 0x8c8   :  { %1261 = vmatprep.subr.bf16.mxu0 %v1354_v2 }
 0x8cb   :  { %1263 = vmatpush3.bf16.msra.mxu0 %v1404_v12 }
 0x8cc   :  { %1270 = vmatprep.subr.bf16.mxu0 %v1354_v2 }
 0x999   :  { %v489_v19 = vpop.f32.mrb[4].mxu0 }
 0x99a   :  { %v494_v21 = vrot.slane %v489_v19, 5  ;;  %v1169_v22 = vpop.f32.mrb[5].mxu0 }
 0x99c   :  { %v496_v23 = vadd.f32 %v494_v21, %v1428_v20 }
 0x99e   :  { %1313 = vtanh.f32 %v496_v23  ;;  %v1057_v25 = vmul.f32 -1.442695, %v496_v23 }
 0x9a0   :  { %1315 = vpow2.f32 %v1057_v25 }
 0x9a8   :  { %v1314_v24 = vpop.eup %1313 }
 0x9a9   :  { %509 = vrot.lane.b32.xlu1 %v1314_v24, %s1357_s24 }
 0x9aa   :  { %v1316_v26 = vpop.eup %1315 }
 0x9ab   :  { %v500_v27 = vadd.f32 1.0, %v1316_v26 }
 0x9ad   :  { %1317 = vrcp.f32 %v500_v27 }
 0x9b7   :  { %v1318_v28 = vpop.eup %1317 }
 0x9b8   :  { %v507_v32 = vmul.f32 %v1318_v28, %v505_v31 }
 0xa1b   :  { %v510_v29 = vpop.permute.xlu1 %509 }
 0xa1c   :  { %v512_v30 = vmul.f32 %v1318_v28, %v510_v29 }
 0xa1e   :  { %514 = vrot.lane.b32.xlu0 %v512_v30, %s1358_s25 }
 0xa90   :  { %v515_v33 = vpop.permute.xlu0 %514 }
 0xa91   :  { %v517_v34 = vadd.f32 %v515_v33, %v507_v32 }
 0xa93   :  { %1319 = vtanh.f32 %v517_v34  ;;  %v612_v52 = vrot.slane %v517_v34, 7 }
 0xa9d   :  { %v1320_v35 = vpop.eup %1319 }
 0xa9e   :  { %520 = vrot.lane.b32.xlu1 %v1320_v35, %s1357_s24 }
 0xb10   :  { %v521_v36 = vpop.permute.xlu1 %520 }
 0xb11   :  { %v523_v37 = vmul.f32 %v1318_v28, %v521_v36 }
 0xb13   :  { %v525_v38 = vrot.slane %v523_v37, 3  ;;  %v957_v39 = vsel %vm956_vm6, %v955_v17, %v523_v37 }
 0xb15   :  { %526 = vrot.lane.b32.xlu0 %v525_v38, %s1358_s25 }
 0xb87   :  { %v527_v40 = vpop.permute.xlu0 %526 }
 0xb88   :  { %1179 = vmatmul.mubr.msk.f32.vlgmr.msra.gmra.mrb[4].mxu1 %vm105_vm3, %v527_v40 }
 0xb89   :  { %1266 = vmatpush3.bf16.msra.mxu1 %v1384_v5  ;;  %1200 = vmatprep.mubr.msk.f32.mxu1 %vm1355_vm0, %v1356_v11 }
 0xb8a   :  { %1267 = vmatprep.subr.bf16.mxu1 %v1354_v2 }
 0xb8d   :  { %1269 = vmatpush3.bf16.msra.mxu1 %v1404_v12 }
 0xb8e   :  { %1276 = vmatprep.subr.bf16.mxu1 %v1354_v2 }
 0xc5b   :  { %v596_v41 = vpop.f32.mrb[4].mxu1 }
 0xc5c   :  { %v601_v42 = vrot.slane %v596_v41, 4  ;;  %v1180_v43 = vpop.f32.mrb[5].mxu1 }
 0xc5e   :  { %v603_v44 = vadd.f32 %v601_v42, %v1428_v20 }
 0xc60   :  { %1321 = vtanh.f32 %v603_v44  ;;  %v1059_v46 = vmul.f32 -1.442695, %v603_v44 }
 0xc62   :  { %1323 = vpow2.f32 %v1059_v46 }
 0xc6a   :  { %v1322_v45 = vpop.eup %1321 }
 0xc6b   :  { %616 = vrot.lane.b32.xlu1 %v1322_v45, %s1357_s24 }
 0xc6c   :  { %v1324_v47 = vpop.eup %1323 }
 0xc6d   :  { %v607_v48 = vadd.f32 1.0, %v1324_v47 }
 0xc6f   :  { %1325 = vrcp.f32 %v607_v48 }
 0xc79   :  { %v1326_v49 = vpop.eup %1325 }
 0xc7a   :  { %v614_v53 = vmul.f32 %v1326_v49, %v612_v52 }
 0xcdd   :  { %v617_v50 = vpop.permute.xlu1 %616 }
 0xcde   :  { %v619_v51 = vmul.f32 %v1326_v49, %v617_v50 }
 0xce0   :  { %621 = vrot.lane.b32.xlu0 %v619_v51, %s1358_s25 }
 0xd52   :  { %v622_v54 = vpop.permute.xlu0 %621 }
 0xd53   :  { %v624_v55 = vadd.f32 %v622_v54, %v614_v53 }
 0xd55   :  { %1327 = vtanh.f32 %v624_v55 }
 0xd5f   :  { %v1328_v56 = vpop.eup %1327 }
 0xd60   :  { %627 = vrot.lane.b32.xlu1 %v1328_v56, %s1357_s24 }
 0xdd2   :  { %v628_v57 = vpop.permute.xlu1 %627 }
 0xdd3   :  { %v630_v58 = vmul.f32 %v1326_v49, %v628_v57  ;;  %v19_v57 = vld [vmem:[%s1533_s1 + $0x40] sm:$0xff] }
 0xdd5   :  { %v632_v59 = vrot.slane %v630_v58, 4  ;;  %v959_v60 = vsel %vm958_vm7, %v957_v39, %v630_v58  ;;  %v20_v58 = vld [vmem:[%s1533_s1 + $0x48] sm:$0xff] }
 0xdd7   :  { %633 = vrot.lane.b32.xlu0 %v632_v59, %s1358_s25 }
 0xe49   :  { %v634_v61 = vpop.permute.xlu0 %633 }
 0xe4a   :  { %1190 = vmatmul.mubr.msk.f32.vlgmr.msra.gmra.mrb[6].mxu0 %vm105_vm3, %v634_v61 }
 0xe4b   :  { %1272 = vmatpush3.bf16.msra.mxu0 %v1384_v5  ;;  %1211 = vmatprep.mubr.msk.f32.mxu0 %vm1355_vm0, %v1356_v11 }
 0xe4c   :  { %1273 = vmatprep.subr.bf16.mxu0 %v1354_v2 }
 0xe4f   :  { %1275 = vmatpush3.bf16.msra.mxu0 %v1404_v12  ;;  %v719_v12 = vrot.slane %v624_v55, 7 }
 0xf1d   :  { %v703_v62 = vpop.f32.mrb[6].mxu0 }
 0xf1e   :  { %v708_v63 = vrot.slane %v703_v62, 3  ;;  %v1191_v0 = vpop.f32.mrb[7].mxu0 }
 0xf20   :  { %v710_v1 = vadd.f32 %v708_v63, %v1428_v20 }
 0xf22   :  { %1329 = vtanh.f32 %v710_v1  ;;  %v1061_v4 = vmul.f32 -1.442695, %v710_v1 }
 0xf24   :  { %1331 = vpow2.f32 %v1061_v4  ;;  %v1066_v4 = vld [vmem:[%s1533_s1 + $0x58] ss:$0 sm:$0xff] }
 0xf2c   :  { %v1330_v3 = vpop.eup %1329 }
 0xf2d   :  { %723 = vrot.lane.b32.xlu1 %v1330_v3, %s1357_s24 }
 0xf2e   :  { %v1332_v6 = vpop.eup %1331 }
 0xf2f   :  { %v714_v5 = vadd.f32 1.0, %v1332_v6 }
 0xf31   :  { %1333 = vrcp.f32 %v714_v5 }
 0xf3b   :  { %v1334_v7 = vpop.eup %1333 }
 0xf3c   :  { %v721_v10 = vmul.f32 %v1334_v7, %v719_v12 }
 0xf9f   :  { %v724_v8 = vpop.permute.xlu1 %723 }
 0xfa0   :  { %v726_v9 = vmul.f32 %v1334_v7, %v724_v8 }
 0xfa2   :  { %728 = vrot.lane.b32.xlu0 %v726_v9, %s1358_s25 }
0x1014   :  { %v729_v13 = vpop.permute.xlu0 %728 }
0x1015   :  { %v731_v14 = vadd.f32 %v729_v13, %v721_v10 }
0x1017   :  { %1335 = vtanh.f32 %v731_v14 }
0x1021   :  { %v1336_v15 = vpop.eup %1335 }
0x1022   :  { %734 = vrot.lane.b32.xlu1 %v1336_v15, %s1357_s24 }
0x1094   :  { %v735_v16 = vpop.permute.xlu1 %734 }
0x1095   :  { %v737_v17 = vmul.f32 %v1334_v7, %v735_v16 }
0x1097   :  { %v739_v18 = vrot.slane %v737_v17, 5  ;;  %v961_v19 = vsel %vm960_vm8, %v959_v60, %v737_v17  ;;  %v21_v60 = vld [vmem:[%s1533_s1 + $0x50] sm:$0xff] }
0x1098   :  { %v1280_v61 = vpack.c.bf16 %v21_v60, %v20_v58 }
0x1099   :  { %740 = vrot.lane.b32.xlu0 %v739_v18, %s1358_s25 }
0x110b   :  { %v741_v21 = vpop.permute.xlu0 %740 }
0x110c   :  { %1201 = vmatmul.mubr.msk.f32.vlgmr.msra.gmra.mrb[6].mxu1 %vm105_vm3, %v741_v21 }
0x110d   :  { %1222 = vmatprep.mubr.msk.f32.mxu1 %vm1355_vm0, %v1356_v11  ;;  %v826_v11 = vrot.slane %v731_v14, 7 }
0x11df   :  { %v810_v22 = vpop.f32.mrb[6].mxu1 }
0x11e0   :  { %v815_v23 = vrot.slane %v810_v22, 2  ;;  %v1202_v24 = vpop.f32.mrb[7].mxu1 }
0x11e2   :  { %v817_v25 = vadd.f32 %v815_v23, %v1428_v20 }
0x11e4   :  { %1337 = vtanh.f32 %v817_v25  ;;  %v1063_v27 = vmul.f32 -1.442695, %v817_v25 }
0x11e6   :  { %1339 = vpow2.f32 %v1063_v27 }
0x11ee   :  { %v1338_v26 = vpop.eup %1337 }
0x11ef   :  { %830 = vrot.lane.b32.xlu1 %v1338_v26, %s1357_s24 }
0x11f0   :  { %v1340_v28 = vpop.eup %1339 }
0x11f1   :  { %v821_v29 = vadd.f32 1.0, %v1340_v28 }
0x11f3   :  { %1341 = vrcp.f32 %v821_v29 }
0x11fd   :  { %v1342_v30 = vpop.eup %1341 }
0x11fe   :  { %v828_v33 = vmul.f32 %v1342_v30, %v826_v11 }
0x1261   :  { %v831_v31 = vpop.permute.xlu1 %830 }
0x1262   :  { %v833_v32 = vmul.f32 %v1342_v30, %v831_v31 }
0x1264   :  { %835 = vrot.lane.b32.xlu0 %v833_v32, %s1358_s25 }
0x12d6   :  { %v836_v34 = vpop.permute.xlu0 %835 }
0x12d7   :  { %v838_v35 = vadd.f32 %v836_v34, %v828_v33 }
0x12d9   :  { %1343 = vtanh.f32 %v838_v35  ;;  %v933_v53 = vrot.slane %v838_v35, 7 }
0x12e3   :  { %v1344_v36 = vpop.eup %1343 }
0x12e4   :  { %841 = vrot.lane.b32.xlu1 %v1344_v36, %s1357_s24 }
0x1356   :  { %v842_v37 = vpop.permute.xlu1 %841 }
0x1357   :  { %v844_v38 = vmul.f32 %v1342_v30, %v842_v37 }
0x1359   :  { %v846_v39 = vrot.slane %v844_v38, 6  ;;  %v963_v40 = vsel %vm962_vm9, %v961_v19, %v844_v38 }
0x135b   :  { %847 = vrot.lane.b32.xlu0 %v846_v39, %s1358_s25 }
0x13cd   :  { %v848_v41 = vpop.permute.xlu0 %847 }
0x13ce   :  { %1212 = vmatmul.mubr.msk.f32.vlgmr.msra.gmra.mrb[8].mxu0 %vm105_vm3, %v848_v41 }
0x14a1   :  { %v917_v42 = vpop.f32.mrb[8].mxu0 }
0x14a2   :  { %v922_v43 = vrot.slane %v917_v42, 1  ;;  %v1213_v44 = vpop.f32.mrb[9].mxu0 }
0x14a4   :  { %v924_v45 = vadd.f32 %v922_v43, %v1428_v20  ;;  %v18_v20 = vld [vmem:[%s1533_s1 + $0x38] sm:$0xff] }
0x14a5   :  { %v1277_v59 = vpack.c.bf16 %v19_v57, %v18_v20 }
0x14a6   :  { %1345 = vtanh.f32 %v924_v45  ;;  %v1065_v47 = vmul.f32 -1.442695, %v924_v45 }
0x14a7   :  { %1278 = vmatpush3.bf16.msra.mxu1 %v1277_v59 }
0x14a8   :  { %1347 = vpow2.f32 %v1065_v47  ;;  %1279 = vmatprep.subr.bf16.mxu1 %v1354_v2 }
0x14ab   :  { %1281 = vmatpush3.bf16.msra.mxu1 %v1280_v61 }
0x14b0   :  { %v1346_v46 = vpop.eup %1345 }
0x14b1   :  { %937 = vrot.lane.b32.xlu1 %v1346_v46, %s1357_s24 }
0x14b2   :  { %v1348_v48 = vpop.eup %1347 }
0x14b3   :  { %v928_v49 = vadd.f32 1.0, %v1348_v48 }
0x14b5   :  { %1349 = vrcp.f32 %v928_v49 }
0x14bf   :  { %v1350_v50 = vpop.eup %1349 }
0x14c0   :  { %v935_v54 = vmul.f32 %v1350_v50, %v933_v53 }
0x1523   :  { %v938_v51 = vpop.permute.xlu1 %937 }
0x1524   :  { %v940_v52 = vmul.f32 %v1350_v50, %v938_v51 }
0x1526   :  { %942 = vrot.lane.b32.xlu0 %v940_v52, %s1358_s25 }
0x1598   :  { %v943_v55 = vpop.permute.xlu0 %942 }
0x1599   :  { %v945_v56 = vadd.f32 %v943_v55, %v935_v54 }
0x159b   :  { %1351 = vtanh.f32 %v945_v56 }
0x15a5   :  { %v1352_v62 = vpop.eup %1351 }
0x15a6   :  { %948 = vrot.lane.b32.xlu1 %v1352_v62, %s1357_s24 }
0x1618   :  { %v949_v63 = vpop.permute.xlu1 %948 }
0x1619   :  { %v951_v0 = vmul.f32 %v1350_v50, %v949_v63 }
0x161b   :  { %v965_v1 = vsel %vm964_vm10, %v963_v40, %v951_v0 }
0x161c   :  { %971 = vrot.lane.b32.xlu0 %v965_v1, %s1358_s25 }
0x168e   :  { %v972_v3 = vpop.permute.xlu0 %971 }
0x168f   :  { %1223 = vmatmul.mubr.msk.f32.vlgmr.msra.gmra.mrb[8].mxu1 %vm105_vm3, %v972_v3 }
0x1762   :  { %v1041_v6 = vpop.f32.mrb[8].mxu1 }
0x1763   :  { %v1042_v5 = vadd.f32 %v1066_v4, %v1041_v6  ;;  %v1224_v2 = vpop.f32.mrb[9].mxu1 }
0x1765   :  { %1045 = vst [vmem:[%s1534_s2] sm:$0xff] %v1042_v5 }

</bundles_post_ra>
